<compile_context>
chip_gen: v7x
topology: tpu7x:2x2x1
jax: 0.10.0
libtpu: 0.0.40
codegen_flags: <defaults>
</compile_context>

<pallas_src>
import jax
import jax.numpy as jnp
from jax import lax
from jax.experimental import pallas as pl
from jax.experimental.pallas import tpu as pltpu


# ------------------------------ helpers ------------------------------------ #

_SQRT1_2 = 0.7071067811865476


def _gelu(x):
    # exact GELU (nn.GELU default): 0.5 * x * (1 + erf(x / sqrt(2)))
    return 0.5 * x * (1.0 + lax.erf(x * jnp.asarray(_SQRT1_2, x.dtype)))


def _fold_bn(w, b, gamma, beta, mean, var, eps=1e-5):
    # BN(xW + b) in eval mode == x (W*scale) + ((b - mean)*scale + beta)
    scale = gamma * lax.rsqrt(var + eps)           # (1, n)
    return w * scale, (b - mean) * scale + beta


def prepare_params(params, use_bf16=True):
    """Fold BatchNorms into Linears and pre-split the concat-consuming weights."""
    wl, bl = _fold_bn(params["wl"], params["bl"], params["gl"], params["betal"],
                      params["ml"], params["vl"])
    wr, br = _fold_bn(params["wr"], params["br"], params["gr"], params["betar"],
                      params["mr"], params["vr"])
    wc, bc = _fold_bn(params["wc"], params["bc"], params["gc"], params["betac"],
                      params["mc"], params["vc"])

    # split points derived from shapes (no hardcoded 16/18)
    k_eye = params["wl"].shape[1]          # width of one eye branch (16)
    k_eyes = params["wc"].shape[1]         # width of the concat stage (18)
    wc_l, wc_r = wc[:k_eye, :], wc[k_eye:, :]
    wf_e, wf_h = params["wf"][:k_eyes, :], params["wf"][k_eyes:, :]

    eye_dtype = jnp.bfloat16 if use_bf16 else jnp.float32
    return dict(
        eye_dtype=eye_dtype,
        wl=wl.astype(eye_dtype), bl=bl,
        wr=wr.astype(eye_dtype), br=br,
        wc_l=wc_l, wc_r=wc_r, bc=bc,
        wf_e=wf_e, wf_h=wf_h, bf=params["bf"],
    )


# ----------------------------- Pallas kernel ------------------------------- #

def gaze_kernel(
    left_ref, right_ref, hp_ref,                    # activations (batch tile, f32)
    wl_ref, bl_ref, wr_ref, br_ref,                 # folded eye Linears
    wc_l_ref, wc_r_ref, bc_ref,                     # folded concat Linear (split)
    wf_e_ref, wf_h_ref, bf_ref,                     # fc1 (split)
    out_ref,
):
    mm_dtype = wl_ref.dtype  # bf16 (default) or f32; cast happens in-kernel only

    # left / right branches: matmul -> f32 acc -> bias -> GELU
    left_x = jnp.dot(left_ref[...].astype(mm_dtype), wl_ref[...],
                     preferred_element_type=jnp.float32) + bl_ref[...]
    left_x = _gelu(left_x)
    right_x = jnp.dot(right_ref[...].astype(mm_dtype), wr_ref[...],
                      preferred_element_type=jnp.float32) + br_ref[...]
    right_x = _gelu(right_x)

    # eyes_x = concat(left_x, right_x) @ Wc + bc   (split-weight form, no concat)
    eyes_x = (jnp.dot(left_x, wc_l_ref[...], preferred_element_type=jnp.float32)
              + jnp.dot(right_x, wc_r_ref[...], preferred_element_type=jnp.float32)
              + bc_ref[...])
    eyes_x = _gelu(eyes_x)

    # fc1 = concat(eyes_x, headpose) @ Wf + bf
    fc1 = jnp.dot(eyes_x, wf_e_ref[...], preferred_element_type=jnp.float32) + bf_ref[...]
    # headpose contribution as VPU broadcast FMAs (K is tiny; avoid an MXU pass)
    hp = hp_ref[...]
    wf_h = wf_h_ref[...]
    for k in range(hp.shape[1]):
        fc1 = fc1 + hp[:, k:k + 1] * wf_h[k:k + 1, :]

    # TODO(synk): pad output to 128 lanes only if profiling shows vst.msk stalls.
    out_ref[...] = _gelu(fc1).astype(out_ref.dtype)


# ------------------------------- wrapper ------------------------------------ #

def gaze_forward(left_eye_nchw, right_eye_nchw, headpose, params,
                 *, tb=1024, use_bf16=True):
    """Batch-tiled, pipelined forward pass.

    tb: batch tile (multiple of 8). Default 1024 amortizes per-grid-step
        overhead on v6e/v7x; sweep towards 2048 on v7x/v6e if desired (the
        explicit vmem_limit_bytes below is derived from the tile footprint).
    """
    assert tb % 8 == 0
    B = left_eye_nchw.shape[0]
    left_flat = left_eye_nchw.reshape(B, -1)     # torch.flatten(x, 1), NCHW row-major
    right_flat = right_eye_nchw.reshape(B, -1)
    F = left_flat.shape[1]
    hp_dim = headpose.shape[1]

    p = prepare_params(params, use_bf16=use_bf16)
    out_features = p["wf_e"].shape[1]

    # Batch tiling with NO padding copies:
    #  - whole batch in one tile  -> block dim == full array dim (always legal)
    #  - otherwise TB = tb (multiple of 8) and the ragged last block uses
    #    Pallas partial-block handling (rows independent, OOB writes masked).
    TB = B if B <= tb else tb
    grid = (pl.cdiv(B, TB),)

    def batch_map(i):
        return (i, 0)

    def const_map(i):
        return (0, 0)

    def act_spec(cols):
        return pl.BlockSpec((TB, cols), batch_map)

    def w_spec(arr):
        return pl.BlockSpec(arr.shape, const_map)    # resident across grid steps

    weights = (
        p["wl"], p["bl"], p["wr"], p["br"],
        p["wc_l"], p["wc_r"], p["bc"],
        p["wf_e"], p["wf_h"], p["bf"],
    )
    args = (left_flat, right_flat, headpose) + weights
    in_specs = [act_spec(F), act_spec(F), act_spec(hp_dim)] + [w_spec(w) for w in weights]
    out_specs = pl.BlockSpec((TB, out_features), batch_map)

    # ---- scoped VMEM budget: double-buffered activation tiles + headroom ----
    act_itemsize = left_flat.dtype.itemsize
    tile_bytes = 2 * (2 * TB * F * act_itemsize)                 # 2 eyes, 2 buffers
    tile_bytes += 2 * TB * hp_dim * 4 + 2 * TB * out_features * 4
    vmem_limit_bytes = int(min(max(tile_bytes + (16 << 20), 32 << 20), 56 << 20))

    # ---- advisory cost estimate: clearly mem-bound on the eye streams ----
    k_eye = p["wl"].shape[1]
    k_eyes = p["wc_l"].shape[0] + p["wc_r"].shape[0]
    n_c = p["bc"].shape[1]
    flops = (2 * B * F * k_eye * 2            # two eye matmuls
             + 2 * B * k_eyes * n_c           # concat stage
             + 2 * B * (n_c + hp_dim) * out_features)
    transcendentals = B * (2 * k_eye + n_c + out_features)       # erf per GELU elt
    weight_bytes = sum(int(w.size) * w.dtype.itemsize for w in weights)
    bytes_accessed = (2 * B * F * act_itemsize + B * hp_dim * 4
                      + B * out_features * 4 + weight_bytes)
    cost = pl.CostEstimate(flops=int(flops),
                           transcendentals=int(transcendentals),
                           bytes_accessed=int(bytes_accessed))

    # TODO(synk): if an xprof trace on v7x shows one TensorCore idle, switch to
    # pltpu.CORE_PARALLEL (grid must have >= 2 steps) instead of "parallel".
    out = pl.pallas_call(
        gaze_kernel,
        out_shape=jax.ShapeDtypeStruct((B, out_features), jnp.float32),
        grid=grid,
        in_specs=in_specs,
        out_specs=out_specs,
        compiler_params=pltpu.CompilerParams(
            dimension_semantics=("parallel",),
            vmem_limit_bytes=vmem_limit_bytes),
        cost_estimate=cost,
    )(*args)
    return out


# ------------------------- deterministic parameters ------------------------- #

def init_params(key, in_features, out_features):
    ks = jax.random.split(key, 24)
    i = iter(range(24))

    def lin(k_w, k_b, fan_in, fan_out):
        bound = 1.0 / jnp.sqrt(float(fan_in))
        w = jax.random.uniform(k_w, (fan_in, fan_out), jnp.float32, -bound, bound)
        b = jax.random.uniform(k_b, (1, fan_out), jnp.float32, -bound, bound)
        return w, b

    def bn(k_g, k_b, k_m, n):
        gamma = 1.0 + 0.1 * jax.random.normal(k_g, (1, n), jnp.float32)
        beta = 0.1 * jax.random.normal(k_b, (1, n), jnp.float32)
        mean = 0.1 * jax.random.normal(k_m, (1, n), jnp.float32)
        var = jnp.ones((1, n), jnp.float32)
        return gamma, beta, mean, var

    wl, bl = lin(ks[next(i)], ks[next(i)], in_features, 16)
    gl, betal, ml, vl = bn(ks[next(i)], ks[next(i)], ks[next(i)], 16)
    wr, br = lin(ks[next(i)], ks[next(i)], in_features, 16)
    gr, betar, mr, vr = bn(ks[next(i)], ks[next(i)], ks[next(i)], 16)
    wc, bc = lin(ks[next(i)], ks[next(i)], 32, 18)
    gc, betac, mc, vc = bn(ks[next(i)], ks[next(i)], ks[next(i)], 18)
    wf, bf = lin(ks[next(i)], ks[next(i)], 20, out_features)

    return dict(wl=wl, bl=bl, gl=gl, betal=betal, ml=ml, vl=vl,
                wr=wr, br=br, gr=gr, betar=betar, mr=mr, vr=vr,
                wc=wc, bc=bc, gc=gc, betac=betac, mc=mc, vc=vc,
                wf=wf, bf=bf)


# --------------------------- references -------------------------------------- #

def mirrored_reference(left_eye, right_eye, headpose, params, use_bf16=True):
    """Pure-JAX mirror of exactly what the kernel computes (folded BN, bf16 eye
    matmuls, broadcast-FMA headpose contribution)."""
    p = prepare_params(params, use_bf16=use_bf16)
    B = left_eye.shape[0]
    mm = p["wl"].dtype
    l = left_eye.reshape(B, -1).astype(mm)
    r = right_eye.reshape(B, -1).astype(mm)
    lx = _gelu(jnp.dot(l, p["wl"], preferred_element_type=jnp.float32) + p["bl"])
    rx = _gelu(jnp.dot(r, p["wr"], preferred_element_type=jnp.float32) + p["br"])
    eyes = _gelu(jnp.dot(lx, p["wc_l"], preferred_element_type=jnp.float32)
                 + jnp.dot(rx, p["wc_r"], preferred_element_type=jnp.float32)
                 + p["bc"])
    fc1 = jnp.dot(eyes, p["wf_e"], preferred_element_type=jnp.float32) + p["bf"]
    for k in range(headpose.shape[1]):
        fc1 = fc1 + headpose[:, k:k + 1] * p["wf_h"][k:k + 1, :]
    return _gelu(fc1)


def torch_semantics_reference(left_eye, right_eye, headpose, p):
    """Faithful f32 transcription of the PyTorch module (unfolded BN, no bf16)."""
    def bnorm(x, g, b, m, v):
        return g * (x - m) * lax.rsqrt(v + 1e-5) + b

    B = left_eye.shape[0]
    lx = _gelu(bnorm(left_eye.reshape(B, -1) @ p["wl"] + p["bl"],
                     p["gl"], p["betal"], p["ml"], p["vl"]))
    rx = _gelu(bnorm(right_eye.reshape(B, -1) @ p["wr"] + p["br"],
                     p["gr"], p["betar"], p["mr"], p["vr"]))
    eyes = jnp.concatenate([lx, rx], axis=1)
    eyes = _gelu(bnorm(eyes @ p["wc"] + p["bc"], p["gc"], p["betac"], p["mc"], p["vc"]))
    eh = jnp.concatenate([eyes, headpose], axis=1)
    return _gelu(eh @ p["wf"] + p["bf"])


# ----------------------------------- main ------------------------------------ #

if __name__ == "__main__":
    B, C, H, W = 2, 4, 16, 16        # small NCHW eye patches
    in_features = C * H * W          # identity backbone -> flatten
    out_features = 2                 # (yaw, pitch)
    headpose_dim = 2                 # 20 - 18 from fc1 input size

    key = jax.random.PRNGKey(0)
    k_l, k_r, k_h, k_p = jax.random.split(key, 4)

    left_eye = jax.random.normal(k_l, (B, C, H, W), jnp.float32)
    right_eye = jax.random.normal(k_r, (B, C, H, W), jnp.float32)
    headpose = jax.random.normal(k_h, (B, headpose_dim), jnp.float32)
    params = init_params(k_p, in_features, out_features)

    out = jax.block_until_ready(gaze_forward(left_eye, right_eye, headpose, params))
    assert out.shape == (B, out_features)

    # tight check: kernel vs mirror of its own math (folded BN + bf16 eye matmuls)
    ref_exact = jax.block_until_ready(
        mirrored_reference(left_eye, right_eye, headpose, params))
    assert jnp.allclose(out, ref_exact, atol=1e-4, rtol=1e-4), (out, ref_exact)

    # loose check: semantics vs the original f32 module (bf16 eye matmul => ~1e-3 drift)
    ref_torch = jax.block_until_ready(
        torch_semantics_reference(left_eye, right_eye, headpose, params))
    assert jnp.allclose(out, ref_torch, atol=5e-2, rtol=5e-2), (out, ref_torch)

    print("KERNEL_OK")
</pallas_src>

<mosaic_0001>
module attributes {stable_mosaic.version = 11 : i64} {
  func.func @gaze_kernel(%arg0: i32, %arg1: memref<2x1024xf32, #tpu.memory_space<vmem>>, %arg2: memref<2x1024xf32, #tpu.memory_space<vmem>>, %arg3: memref<2x2xf32, #tpu.memory_space<vmem>>, %arg4: memref<1024x16xbf16, #tpu.memory_space<vmem>>, %arg5: memref<1x16xf32, #tpu.memory_space<vmem>>, %arg6: memref<1024x16xbf16, #tpu.memory_space<vmem>>, %arg7: memref<1x16xf32, #tpu.memory_space<vmem>>, %arg8: memref<16x18xf32, #tpu.memory_space<vmem>>, %arg9: memref<16x18xf32, #tpu.memory_space<vmem>>, %arg10: memref<1x18xf32, #tpu.memory_space<vmem>>, %arg11: memref<18x2xf32, #tpu.memory_space<vmem>>, %arg12: memref<2x2xf32, #tpu.memory_space<vmem>>, %arg13: memref<1x2xf32, #tpu.memory_space<vmem>>, %arg14: memref<2x2xf32, #tpu.memory_space<vmem>>) attributes {dimension_semantics = [#tpu.dimension_semantics<parallel>], iteration_bounds = array<i64: 1>, scalar_prefetch = 0 : i64, scratch_operands = 0 : i64, tpu.core_type = #tpu.core_type<tc>, window_params = [{transform_indices = @transform_0, window_bounds = array<i64: 2, 1024>}, {transform_indices = @transform_1, window_bounds = array<i64: 2, 1024>}, {transform_indices = @transform_2, window_bounds = array<i64: 2, 2>}, {pipeline_mode = #tpu.pipeline_mode<synchronous>, transform_indices = @transform_3, window_bounds = array<i64: 1024, 16>}, {pipeline_mode = #tpu.pipeline_mode<synchronous>, transform_indices = @transform_4, window_bounds = array<i64: 1, 16>}, {pipeline_mode = #tpu.pipeline_mode<synchronous>, transform_indices = @transform_5, window_bounds = array<i64: 1024, 16>}, {pipeline_mode = #tpu.pipeline_mode<synchronous>, transform_indices = @transform_6, window_bounds = array<i64: 1, 16>}, {pipeline_mode = #tpu.pipeline_mode<synchronous>, transform_indices = @transform_7, window_bounds = array<i64: 16, 18>}, {pipeline_mode = #tpu.pipeline_mode<synchronous>, transform_indices = @transform_8, window_bounds = array<i64: 16, 18>}, {pipeline_mode = #tpu.pipeline_mode<synchronous>, transform_indices = @transform_9, window_bounds = array<i64: 1, 18>}, {pipeline_mode = #tpu.pipeline_mode<synchronous>, transform_indices = @transform_10, window_bounds = array<i64: 18, 2>}, {pipeline_mode = #tpu.pipeline_mode<synchronous>, transform_indices = @transform_11, window_bounds = array<i64: 2, 2>}, {pipeline_mode = #tpu.pipeline_mode<synchronous>, transform_indices = @transform_12, window_bounds = array<i64: 1, 2>}, {transform_indices = @transform_13, window_bounds = array<i64: 2, 2>}]} {
    %c0 = arith.constant 0 : index
    %c0_0 = arith.constant 0 : index
    %0 = vector.load %arg1[%c0, %c0_0] : memref<2x1024xf32, #tpu.memory_space<vmem>>, vector<2x1024xf32>
    %1 = arith.truncf %0 : vector<2x1024xf32> to vector<2x1024xbf16>
    %c0_1 = arith.constant 0 : index
    %c0_2 = arith.constant 0 : index
    %2 = vector.load %arg4[%c0_1, %c0_2] : memref<1024x16xbf16, #tpu.memory_space<vmem>>, vector<1024x16xbf16>
    %cst = arith.constant dense<0.000000e+00> : vector<2x16xf32>
    %3 = tpu.matmul %1, %2, %cst {dimension_numbers = #tpu.dot_dimension_numbers<[1], [0], [0], [1], [0, 0, 1, 1], [], []>} : vector<2x1024xbf16>, vector<1024x16xbf16>, vector<2x16xf32> -> vector<2x16xf32>
    %c0_3 = arith.constant 0 : index
    %c0_4 = arith.constant 0 : index
    %4 = vector.load %arg5[%c0_3, %c0_4] : memref<1x16xf32, #tpu.memory_space<vmem>>, vector<1x16xf32>
    %5 = vector.broadcast %4 : vector<1x16xf32> to vector<2x16xf32>
    %6 = arith.addf %3, %5 : vector<2x16xf32>
    %cst_5 = arith.constant 5.000000e-01 : f32
    %7 = vector.broadcast %cst_5 : f32 to vector<2x16xf32>
    %8 = arith.mulf %7, %6 : vector<2x16xf32>
    %cst_6 = arith.constant 0.707106769 : f32
    %9 = vector.broadcast %cst_6 : f32 to vector<2x16xf32>
    %10 = arith.mulf %6, %9 : vector<2x16xf32>
    %11 = math.erf %10 : vector<2x16xf32>
    %cst_7 = arith.constant 1.000000e+00 : f32
    %12 = vector.broadcast %cst_7 : f32 to vector<2x16xf32>
    %13 = arith.addf %12, %11 : vector<2x16xf32>
    %14 = arith.mulf %8, %13 : vector<2x16xf32>
    %c0_8 = arith.constant 0 : index
    %c0_9 = arith.constant 0 : index
    %15 = vector.load %arg2[%c0_8, %c0_9] : memref<2x1024xf32, #tpu.memory_space<vmem>>, vector<2x1024xf32>
    %16 = arith.truncf %15 : vector<2x1024xf32> to vector<2x1024xbf16>
    %c0_10 = arith.constant 0 : index
    %c0_11 = arith.constant 0 : index
    %17 = vector.load %arg6[%c0_10, %c0_11] : memref<1024x16xbf16, #tpu.memory_space<vmem>>, vector<1024x16xbf16>
    %cst_12 = arith.constant dense<0.000000e+00> : vector<2x16xf32>
    %18 = tpu.matmul %16, %17, %cst_12 {dimension_numbers = #tpu.dot_dimension_numbers<[1], [0], [0], [1], [0, 0, 1, 1], [], []>} : vector<2x1024xbf16>, vector<1024x16xbf16>, vector<2x16xf32> -> vector<2x16xf32>
    %c0_13 = arith.constant 0 : index
    %c0_14 = arith.constant 0 : index
    %19 = vector.load %arg7[%c0_13, %c0_14] : memref<1x16xf32, #tpu.memory_space<vmem>>, vector<1x16xf32>
    %20 = vector.broadcast %19 : vector<1x16xf32> to vector<2x16xf32>
    %21 = arith.addf %18, %20 : vector<2x16xf32>
    %cst_15 = arith.constant 5.000000e-01 : f32
    %22 = vector.broadcast %cst_15 : f32 to vector<2x16xf32>
    %23 = arith.mulf %22, %21 : vector<2x16xf32>
    %cst_16 = arith.constant 0.707106769 : f32
    %24 = vector.broadcast %cst_16 : f32 to vector<2x16xf32>
    %25 = arith.mulf %21, %24 : vector<2x16xf32>
    %26 = math.erf %25 : vector<2x16xf32>
    %cst_17 = arith.constant 1.000000e+00 : f32
    %27 = vector.broadcast %cst_17 : f32 to vector<2x16xf32>
    %28 = arith.addf %27, %26 : vector<2x16xf32>
    %29 = arith.mulf %23, %28 : vector<2x16xf32>
    %c0_18 = arith.constant 0 : index
    %c0_19 = arith.constant 0 : index
    %30 = vector.load %arg8[%c0_18, %c0_19] : memref<16x18xf32, #tpu.memory_space<vmem>>, vector<16x18xf32>
    %cst_20 = arith.constant dense<0.000000e+00> : vector<2x18xf32>
    %31 = tpu.matmul %14, %30, %cst_20 {dimension_numbers = #tpu.dot_dimension_numbers<[1], [0], [0], [1], [0, 0, 1, 1], [], []>} : vector<2x16xf32>, vector<16x18xf32>, vector<2x18xf32> -> vector<2x18xf32>
    %c0_21 = arith.constant 0 : index
    %c0_22 = arith.constant 0 : index
    %32 = vector.load %arg9[%c0_21, %c0_22] : memref<16x18xf32, #tpu.memory_space<vmem>>, vector<16x18xf32>
    %cst_23 = arith.constant dense<0.000000e+00> : vector<2x18xf32>
    %33 = tpu.matmul %29, %32, %cst_23 {dimension_numbers = #tpu.dot_dimension_numbers<[1], [0], [0], [1], [0, 0, 1, 1], [], []>} : vector<2x16xf32>, vector<16x18xf32>, vector<2x18xf32> -> vector<2x18xf32>
    %34 = arith.addf %31, %33 : vector<2x18xf32>
    %c0_24 = arith.constant 0 : index
    %c0_25 = arith.constant 0 : index
    %35 = vector.load %arg10[%c0_24, %c0_25] : memref<1x18xf32, #tpu.memory_space<vmem>>, vector<1x18xf32>
    %36 = vector.broadcast %35 : vector<1x18xf32> to vector<2x18xf32>
    %37 = arith.addf %34, %36 : vector<2x18xf32>
    %cst_26 = arith.constant 5.000000e-01 : f32
    %38 = vector.broadcast %cst_26 : f32 to vector<2x18xf32>
    %39 = arith.mulf %38, %37 : vector<2x18xf32>
    %cst_27 = arith.constant 0.707106769 : f32
    %40 = vector.broadcast %cst_27 : f32 to vector<2x18xf32>
    %41 = arith.mulf %37, %40 : vector<2x18xf32>
    %42 = math.erf %41 : vector<2x18xf32>
    %cst_28 = arith.constant 1.000000e+00 : f32
    %43 = vector.broadcast %cst_28 : f32 to vector<2x18xf32>
    %44 = arith.addf %43, %42 : vector<2x18xf32>
    %45 = arith.mulf %39, %44 : vector<2x18xf32>
    %c0_29 = arith.constant 0 : index
    %c0_30 = arith.constant 0 : index
    %46 = vector.load %arg11[%c0_29, %c0_30] : memref<18x2xf32, #tpu.memory_space<vmem>>, vector<18x2xf32>
    %cst_31 = arith.constant dense<0.000000e+00> : vector<2x2xf32>
    %47 = tpu.matmul %45, %46, %cst_31 {dimension_numbers = #tpu.dot_dimension_numbers<[1], [0], [0], [1], [0, 0, 1, 1], [], []>} : vector<2x18xf32>, vector<18x2xf32>, vector<2x2xf32> -> vector<2x2xf32>
    %c0_32 = arith.constant 0 : index
    %c0_33 = arith.constant 0 : index
    %48 = vector.load %arg13[%c0_32, %c0_33] : memref<1x2xf32, #tpu.memory_space<vmem>>, vector<1x2xf32>
    %49 = vector.broadcast %48 : vector<1x2xf32> to vector<2x2xf32>
    %50 = arith.addf %47, %49 : vector<2x2xf32>
    %c0_34 = arith.constant 0 : index
    %c0_35 = arith.constant 0 : index
    %51 = vector.load %arg3[%c0_34, %c0_35] : memref<2x2xf32, #tpu.memory_space<vmem>>, vector<2x2xf32>
    %c0_36 = arith.constant 0 : index
    %c0_37 = arith.constant 0 : index
    %52 = vector.load %arg12[%c0_36, %c0_37] : memref<2x2xf32, #tpu.memory_space<vmem>>, vector<2x2xf32>
    %53 = vector.extract_strided_slice %51 {offsets = [0, 0], sizes = [2, 1], strides = [1, 1]} : vector<2x2xf32> to vector<2x1xf32>
    %54 = vector.extract_strided_slice %52 {offsets = [0, 0], sizes = [1, 2], strides = [1, 1]} : vector<2x2xf32> to vector<1x2xf32>
    %55 = vector.broadcast %53 : vector<2x1xf32> to vector<2x2xf32>
    %56 = vector.broadcast %54 : vector<1x2xf32> to vector<2x2xf32>
    %57 = arith.mulf %55, %56 : vector<2x2xf32>
    %58 = arith.addf %50, %57 : vector<2x2xf32>
    %59 = vector.extract_strided_slice %51 {offsets = [0, 1], sizes = [2, 1], strides = [1, 1]} : vector<2x2xf32> to vector<2x1xf32>
    %60 = vector.extract_strided_slice %52 {offsets = [1, 0], sizes = [1, 2], strides = [1, 1]} : vector<2x2xf32> to vector<1x2xf32>
    %61 = vector.broadcast %59 : vector<2x1xf32> to vector<2x2xf32>
    %62 = vector.broadcast %60 : vector<1x2xf32> to vector<2x2xf32>
    %63 = arith.mulf %61, %62 : vector<2x2xf32>
    %64 = arith.addf %58, %63 : vector<2x2xf32>
    %cst_38 = arith.constant 5.000000e-01 : f32
    %65 = vector.broadcast %cst_38 : f32 to vector<2x2xf32>
    %66 = arith.mulf %65, %64 : vector<2x2xf32>
    %cst_39 = arith.constant 0.707106769 : f32
    %67 = vector.broadcast %cst_39 : f32 to vector<2x2xf32>
    %68 = arith.mulf %64, %67 : vector<2x2xf32>
    %69 = math.erf %68 : vector<2x2xf32>
    %cst_40 = arith.constant 1.000000e+00 : f32
    %70 = vector.broadcast %cst_40 : f32 to vector<2x2xf32>
    %71 = arith.addf %70, %69 : vector<2x2xf32>
    %72 = arith.mulf %66, %71 : vector<2x2xf32>
    %c0_41 = arith.constant 0 : index
    %c0_42 = arith.constant 0 : index
    %73 = vector.load %arg14[%c0_41, %c0_42] : memref<2x2xf32, #tpu.memory_space<vmem>>, vector<2x2xf32>
    tpu.vector_store %arg14[%c0_41, %c0_42], %72 {strides = array<i32>} : memref<2x2xf32, #tpu.memory_space<vmem>>, vector<2x2xf32>,
    return
  }
  func.func @transform_0(%arg0: i32) -> (i32, i32) {
    %c0_i32 = arith.constant 0 : i32
    %c0_i32_0 = arith.constant 0 : i32
    return %arg0, %c0_i32 : i32, i32
  }
  func.func @transform_1(%arg0: i32) -> (i32, i32) {
    %c0_i32 = arith.constant 0 : i32
    %c0_i32_0 = arith.constant 0 : i32
    return %arg0, %c0_i32 : i32, i32
  }
  func.func @transform_2(%arg0: i32) -> (i32, i32) {
    %c0_i32 = arith.constant 0 : i32
    %c0_i32_0 = arith.constant 0 : i32
    return %arg0, %c0_i32 : i32, i32
  }
  func.func @transform_3(%arg0: i32) -> (i32, i32) {
    %c0_i32 = arith.constant 0 : i32
    %c0_i32_0 = arith.constant 0 : i32
    %c0_i32_1 = arith.constant 0 : i32
    return %c0_i32, %c0_i32_0 : i32, i32
  }
  func.func @transform_4(%arg0: i32) -> (i32, i32) {
    %c0_i32 = arith.constant 0 : i32
    %c0_i32_0 = arith.constant 0 : i32
    %c0_i32_1 = arith.constant 0 : i32
    return %c0_i32, %c0_i32_0 : i32, i32
  }
  func.func @transform_5(%arg0: i32) -> (i32, i32) {
    %c0_i32 = arith.constant 0 : i32
    %c0_i32_0 = arith.constant 0 : i32
    %c0_i32_1 = arith.constant 0 : i32
    return %c0_i32, %c0_i32_0 : i32, i32
  }
  func.func @transform_6(%arg0: i32) -> (i32, i32) {
    %c0_i32 = arith.constant 0 : i32
    %c0_i32_0 = arith.constant 0 : i32
    %c0_i32_1 = arith.constant 0 : i32
    return %c0_i32, %c0_i32_0 : i32, i32
  }
  func.func @transform_7(%arg0: i32) -> (i32, i32) {
    %c0_i32 = arith.constant 0 : i32
    %c0_i32_0 = arith.constant 0 : i32
    %c0_i32_1 = arith.constant 0 : i32
    return %c0_i32, %c0_i32_0 : i32, i32
  }
  func.func @transform_8(%arg0: i32) -> (i32, i32) {
    %c0_i32 = arith.constant 0 : i32
    %c0_i32_0 = arith.constant 0 : i32
    %c0_i32_1 = arith.constant 0 : i32
    return %c0_i32, %c0_i32_0 : i32, i32
  }
  func.func @transform_9(%arg0: i32) -> (i32, i32) {
    %c0_i32 = arith.constant 0 : i32
    %c0_i32_0 = arith.constant 0 : i32
    %c0_i32_1 = arith.constant 0 : i32
    return %c0_i32, %c0_i32_0 : i32, i32
  }
  func.func @transform_10(%arg0: i32) -> (i32, i32) {
    %c0_i32 = arith.constant 0 : i32
    %c0_i32_0 = arith.constant 0 : i32
    %c0_i32_1 = arith.constant 0 : i32
    return %c0_i32, %c0_i32_0 : i32, i32
  }
  func.func @transform_11(%arg0: i32) -> (i32, i32) {
    %c0_i32 = arith.constant 0 : i32
    %c0_i32_0 = arith.constant 0 : i32
    %c0_i32_1 = arith.constant 0 : i32
    return %c0_i32, %c0_i32_0 : i32, i32
  }
  func.func @transform_12(%arg0: i32) -> (i32, i32) {
    %c0_i32 = arith.constant 0 : i32
    %c0_i32_0 = arith.constant 0 : i32
    %c0_i32_1 = arith.constant 0 : i32
    return %c0_i32, %c0_i32_0 : i32, i32
  }
  func.func @transform_13(%arg0: i32) -> (i32, i32) {
    %c0_i32 = arith.constant 0 : i32
    %c0_i32_0 = arith.constant 0 : i32
    return %arg0, %c0_i32 : i32, i32
  }
}

</mosaic_0001>

<bundles_post_ra>
// kernel: tpu_custom_call.1
= control target key start
LH: loop header
LB: loop body
LE: loop exit
PB: predicated region body
PF: predicated region fallthrough
CT: control target
= control target key end

     0   :  { %v54_v28 = vlaneseq  ;;  %v2345_v36 = vmov 1983009808   ;;  %s2891_s0 = inlined_call_operand.vmem [shape: f32[2,1024], index: 0, kind: input, shape index: {}]   ;;  %s2892_s1 = inlined_call_operand.vmem [shape: f32[2,1024], index: 1, kind: input, shape index: {}]   ;;  %s2893_s2 = inlined_call_operand.vmem [shape: f32[2,2], index: 2, kind: input, shape index: {}]   ;;  %s2894_s3 = inlined_call_operand.vmem [shape: bf16[1024,16], index: 3, kind: input, shape index: {}]   ;;  %s2895_s4 = inlined_call_operand.vmem [shape: f32[1,16], index: 4, kind: input, shape index: {}]   ;;  %s2896_s5 = inlined_call_operand.vmem [shape: bf16[1024,16], index: 5, kind: input, shape index: {}]   ;;  %s2897_s6 = inlined_call_operand.vmem [shape: f32[1,16], index: 6, kind: input, shape index: {}]   ;;  %s2898_s7 = inlined_call_operand.vmem [shape: f32[16,18], index: 7, kind: input, shape index: {}]   ;;  %s2899_s8 = inlined_call_operand.vmem [shape: f32[16,18], index: 8, kind: input, shape index: {}]   ;;  %s2900_s9 = inlined_call_operand.vmem [shape: f32[1,18], index: 9, kind: input, shape index: {}]   ;;  %s2901_s10 = inlined_call_operand.vmem [shape: f32[18,2], index: 10, kind: input, shape index: {}]   ;;  %s2902_s11 = inlined_call_operand.vmem [shape: f32[2,2], index: 11, kind: input, shape index: {}]   ;;  %s2903_s12 = inlined_call_operand.vmem [shape: f32[1,2], index: 12, kind: input, shape index: {}]   ;;  %s2904_s13 = inlined_call_operand.hbm [shape: f32[2,2], index: 13, kind: output, shape index: {}]  }
   0x1   :  { %v2181_v0 = vld [vmem:[%s2894_s3 + $0x40] sm:$0xff]   ;;  %v2185_v4 = vld [vmem:[%s2894_s3 + $0x48] sm:$0xff]   ;;  %v2189_v8 = vld [vmem:[%s2894_s3 + $0x50] sm:$0xff]   ;;  %v52_v37 = vunpack.c.l.s4 %v2345_v36 }
   0x2   :  { %v2182_v1 = vld [vmem:[%s2894_s3 + $0xc0] sm:$0xff]   ;;  %1954 = vmatprep.subr.bf16.mxu0 %v2181_v0  ;;  %v2186_v5 = vld [vmem:[%s2894_s3 + $0xc8] sm:$0xff]   ;;  %v2190_v9 = vld [vmem:[%s2894_s3 + $0xd0] sm:$0xff]   ;;  %v2518_v33 = vshrl.u32 %v54_v28, 7 }
   0x3   :  { %v2183_v2 = vld [vmem:[%s2894_s3] sm:$0xff]   ;;  %1976 = vmatprep.subr.bf16.mxu1 %v2182_v1  ;;  %v2187_v6 = vld [vmem:[%s2894_s3 + $0x8] sm:$0xff]   ;;  %v2191_v10 = vld [vmem:[%s2894_s3 + $0x10] sm:$0xff]   ;;  %v53_v39 = vunpack.c.0.s8 %v52_v37 }
   0x4   :  { %v2184_v3 = vld [vmem:[%s2894_s3 + $0x80] sm:$0xff]   ;;  %1955 = vmatpush3.bf16.msra.mxu0 %v2183_v2  ;;  %v2188_v7 = vld [vmem:[%s2894_s3 + $0x88] sm:$0xff]   ;;  %v2192_v11 = vld [vmem:[%s2894_s3 + $0x90] sm:$0xff]  }
   0x5   :  { %1977 = vmatpush3.bf16.msra.mxu1 %v2184_v3  ;;  %1956 = vmatprep.subr.bf16.mxu0 %v2185_v4  ;;  %v2193_v12 = vld [vmem:[%s2894_s3 + $0x58] sm:$0xff]   ;;  %v2197_v16 = vld [vmem:[%s2894_s3 + $0x60] sm:$0xff]   ;;  %v2201_v20 = vld [vmem:[%s2894_s3 + $0x68] sm:$0xff]   ;;  %v2530_v41 = vsub.s32 %v53_v39, %v2518_v33 }
   0x6   :  { %1978 = vmatprep.subr.bf16.mxu1 %v2186_v5  ;;  %v2194_v13 = vld [vmem:[%s2894_s3 + $0xd8] sm:$0xff]   ;;  %v2198_v17 = vld [vmem:[%s2894_s3 + $0xe0] sm:$0xff]   ;;  %v2202_v21 = vld [vmem:[%s2894_s3 + $0xe8] sm:$0xff]  }
   0x7   :  { %v2195_v14 = vld [vmem:[%s2894_s3 + $0x18] sm:$0xff]   ;;  %v2199_v18 = vld [vmem:[%s2894_s3 + $0x20] sm:$0xff]   ;;  %v2203_v22 = vld [vmem:[%s2894_s3 + $0x28] sm:$0xff]  }
   0x8   :  { %1957 = vmatpush3.bf16.msra.mxu0 %v2187_v6  ;;  %v2196_v15 = vld [vmem:[%s2894_s3 + $0x98] sm:$0xff]   ;;  %v2200_v19 = vld [vmem:[%s2894_s3 + $0xa0] sm:$0xff]   ;;  %v2204_v23 = vld [vmem:[%s2894_s3 + $0xa8] sm:$0xff]  }
   0x9   :  { %1979 = vmatpush3.bf16.msra.mxu1 %v2188_v7  ;;  %1958 = vmatprep.subr.bf16.mxu0 %v2189_v8  ;;  %v2205_v24 = vld [vmem:[%s2894_s3 + $0x70] sm:$0xff]   ;;  %v2209_v29 = vld [vmem:[%s2894_s3 + $0x78] sm:$0xff]   ;;  %v46_v34 = vld [vmem:[%s2891_s0] sm:$0xff] }
   0xa   :  { %1980 = vmatprep.subr.bf16.mxu1 %v2190_v9  ;;  %v2206_v25 = vld [vmem:[%s2894_s3 + $0xf0] sm:$0xff]   ;;  %v2210_v30 = vld [vmem:[%s2894_s3 + $0xf8] sm:$0xff]   ;;  %v2214_v35 = vld [vmem:[%s2894_s3 + $0x140] sm:$0xff]   ;;  %v50_v40 = vcombine.high %v46_v34, %v46_v34  ;;  %v57_v42 = vrot.slane %v46_v34, %v2530_v41 }
   0xb   :  { %v2207_v26 = vld [vmem:[%s2894_s3 + $0x30] sm:$0xff]   ;;  %v2211_v31 = vld [vmem:[%s2894_s3 + $0x38] sm:$0xff]   ;;  %v2215_v38 = vld [vmem:[%s2894_s3 + $0x1c0] sm:$0xff]  }
   0xc   :  { %1959 = vmatpush3.bf16.msra.mxu0 %v2191_v10  ;;  %v2208_v27 = vld [vmem:[%s2894_s3 + $0xb0] sm:$0xff]   ;;  %v2212_v32 = vld [vmem:[%s2894_s3 + $0xb8] sm:$0xff]   ;;  %v64_v43 = vrot.slane %v50_v40, %v2530_v41  ;;  %v65_v44 = vcombine.high %v57_v42, %v57_v42  ;;  %v2216_v46 = vld [vmem:[%s2894_s3 + $0x100] sm:$0xff]   ;;  %v92_v47 = vpack.c.bf16 %v57_v42, %v57_v42 }
   0xd   :  { %1981 = vmatpush3.bf16.msra.mxu1 %v2192_v11  ;;  %1960 = vmatprep.subr.bf16.mxu0 %v2193_v12  ;;  %v2217_v49 = vld [vmem:[%s2894_s3 + $0x180] sm:$0xff]   ;;  %v2218_v52 = vld [vmem:[%s2894_s3 + $0x148] sm:$0xff]   ;;  %v2222_v56 = vld [vmem:[%s2894_s3 + $0x150] sm:$0xff]  }
   0xe   :  { %1982 = vmatprep.subr.bf16.mxu1 %v2194_v13  ;;  %v66_v45 = vcombine.high %v64_v43, %v64_v43  ;;  %v94_v48 = vpack.c.bf16 %v64_v43, %v64_v43  ;;  %v93_v50 = vpack.c.bf16 %v65_v44, %v65_v44  ;;  %v2219_v53 = vld [vmem:[%s2894_s3 + $0x1c8] sm:$0xff]   ;;  %v2223_v57 = vld [vmem:[%s2894_s3 + $0x1d0] sm:$0xff]   ;;  %v2226_v60 = vld [vmem:[%s2894_s3 + $0x158] sm:$0xff]  }
   0xf   :  { %v2220_v54 = vld [vmem:[%s2894_s3 + $0x108] sm:$0xff]   ;;  %v2224_v58 = vld [vmem:[%s2894_s3 + $0x110] sm:$0xff]   ;;  %v2227_v61 = vld [vmem:[%s2894_s3 + $0x1d8] sm:$0xff]  }
  0x10   :  { %1961 = vmatpush3.bf16.msra.mxu0 %v2195_v14  ;;  %v95_v51 = vpack.c.bf16 %v66_v45, %v66_v45  ;;  %651 = vmatprep.mubr.bf16.mxu0 %v93_v50  ;;  %v2221_v55 = vld [vmem:[%s2894_s3 + $0x188] sm:$0xff]   ;;  %v2225_v59 = vld [vmem:[%s2894_s3 + $0x190] sm:$0xff]   ;;  %v2228_v62 = vld [vmem:[%s2894_s3 + $0x118] sm:$0xff]  }
  0x11   :  { %1983 = vmatpush3.bf16.msra.mxu1 %v2196_v15  ;;  %1962 = vmatprep.subr.bf16.mxu0 %v2197_v16  ;;  %v2229_v63 = vld [vmem:[%s2894_s3 + $0x198] sm:$0xff]   ;;  %v2230_v0 = vld [vmem:[%s2894_s3 + $0x160] sm:$0xff]   ;;  %v2234_v4 = vld [vmem:[%s2894_s3 + $0x168] sm:$0xff]  }
  0x12   :  { %1984 = vmatprep.subr.bf16.mxu1 %v2198_v17  ;;  %691 = vmatprep.mubr.bf16.mxu1 %v95_v51  ;;  %v2231_v1 = vld [vmem:[%s2894_s3 + $0x1e0] sm:$0xff]   ;;  %v2235_v5 = vld [vmem:[%s2894_s3 + $0x1e8] sm:$0xff]   ;;  %v2238_v8 = vld [vmem:[%s2894_s3 + $0x170] sm:$0xff]  }
  0x13   :  { %v2232_v2 = vld [vmem:[%s2894_s3 + $0x120] sm:$0xff]   ;;  %v2236_v6 = vld [vmem:[%s2894_s3 + $0x128] sm:$0xff]   ;;  %v2239_v9 = vld [vmem:[%s2894_s3 + $0x1f0] sm:$0xff]  }
  0x14   :  { %1963 = vmatpush3.bf16.msra.mxu0 %v2199_v18  ;;  %v2233_v3 = vld [vmem:[%s2894_s3 + $0x1a0] sm:$0xff]   ;;  %v2237_v7 = vld [vmem:[%s2894_s3 + $0x1a8] sm:$0xff]   ;;  %v2240_v11 = vld [vmem:[%s2894_s3 + $0x130] sm:$0xff]  }
  0x15   :  { %1985 = vmatpush3.bf16.msra.mxu1 %v2200_v19  ;;  %1964 = vmatprep.subr.bf16.mxu0 %v2201_v20  ;;  %v47_v10 = vld [vmem:[%s2891_s0 + $0x8] sm:$0xff]  ;;  %v2241_v14 = vld [vmem:[%s2894_s3 + $0x1b0] sm:$0xff]   ;;  %v2242_v15 = vld [vmem:[%s2894_s3 + $0x178] sm:$0xff]  }
  0x16   :  { %1986 = vmatprep.subr.bf16.mxu1 %v2202_v21  ;;  %v74_v12 = vrot.slane %v47_v10, %v2530_v41  ;;  %v67_v13 = vcombine.high %v47_v10, %v47_v10  ;;  %v2243_v18 = vld [vmem:[%s2894_s3 + $0x1f8] sm:$0xff]   ;;  %v2254_v34 = vld [vmem:[%s2896_s5 + $0x88] sm:$0xff]   ;;  %v2256_v36 = vld [vmem:[%s2896_s5 + $0xd0] sm:$0xff]  }
  0x17   :  { %v2244_v19 = vld [vmem:[%s2894_s3 + $0x138] sm:$0xff]   ;;  %v2257_v37 = vld [vmem:[%s2896_s5 + $0x10] sm:$0xff]   ;;  %v2263_v44 = vld [vmem:[%s2896_s5 + $0x60] sm:$0xff]  }
  0x18   :  { %1965 = vmatpush3.bf16.msra.mxu0 %v2203_v22  ;;  %v82_v16 = vcombine.high %v74_v12, %v74_v12  ;;  %v81_v17 = vrot.slane %v67_v13, %v2530_v41  ;;  %v2245_v22 = vld [vmem:[%s2894_s3 + $0x1b8] sm:$0xff]   ;;  %v2264_v45 = vld [vmem:[%s2896_s5 + $0xe0] sm:$0xff]   ;;  %v2269_v50 = vld [vmem:[%s2896_s5 + $0x28] sm:$0xff]  }
  0x19   :  { %1987 = vmatpush3.bf16.msra.mxu1 %v2204_v23  ;;  %1966 = vmatprep.subr.bf16.mxu0 %v2205_v24  ;;  %v2247_v24 = vld [vmem:[%s2896_s5 + $0x40] sm:$0xff]   ;;  %v2259_v39 = vld [vmem:[%s2896_s5 + $0x58] sm:$0xff]   ;;  %v2270_v51 = vld [vmem:[%s2896_s5 + $0xa8] sm:$0xff]  }
  0x1a   :  { %1988 = vmatprep.subr.bf16.mxu1 %v2206_v25  ;;  %v97_v20 = vpack.c.bf16 %v82_v16, %v82_v16  ;;  %v83_v21 = vcombine.high %v81_v17, %v81_v17  ;;  %v2248_v25 = vld [vmem:[%s2896_s5 + $0xc0] sm:$0xff]   ;;  %v98_v28 = vpack.c.bf16 %v81_v17, %v81_v17  ;;  %v2260_v40 = vld [vmem:[%s2896_s5 + $0xd8] sm:$0xff]   ;;  %v2284_v10 = vld [vmem:[%s2896_s5 + $0x148] sm:$0xff]  }
  0x1b   :  { %v2261_v42 = vld [vmem:[%s2896_s5 + $0x18] sm:$0xff]   ;;  %v2287_v13 = vld [vmem:[%s2896_s5 + $0x188] sm:$0xff]   ;;  %v2290_v16 = vld [vmem:[%s2896_s5 + $0x110] sm:$0xff]  }
  0x1c   :  { %1967 = vmatpush3.bf16.msra.mxu0 %v2207_v26  ;;  %v99_v23 = vpack.c.bf16 %v83_v21, %v83_v21  ;;  %v2249_v26 = vld [vmem:[%s2896_s5] sm:$0xff]   ;;  %v2262_v43 = vld [vmem:[%s2896_s5 + $0x98] sm:$0xff]   ;;  %v2291_v17 = vld [vmem:[%s2896_s5 + $0x190] sm:$0xff]  }
  0x1d   :  { %1989 = vmatpush3.bf16.msra.mxu1 %v2208_v27  ;;  %1968 = vmatprep.subr.bf16.mxu0 %v2209_v29  ;;  %v96_v27 = vpack.c.bf16 %v74_v12, %v74_v12  ;;  %v2250_v29 = vld [vmem:[%s2896_s5 + $0x80] sm:$0xff]   ;;  %v2286_v12 = vld [vmem:[%s2896_s5 + $0x108] sm:$0xff]   ;;  %v2295_v21 = vld [vmem:[%s2896_s5 + $0x198] sm:$0xff]  }
  0x1e   :  { %1990 = vmatprep.subr.bf16.mxu1 %v2210_v30  ;;  %v2251_v30 = vld [vmem:[%s2896_s5 + $0x48] sm:$0xff]  }
  0x20   :  { %1969 = vmatpush3.bf16.msra.mxu0 %v2211_v31  ;;  %v2252_v31 = vld [vmem:[%s2896_s5 + $0xc8] sm:$0xff]  }
  0x21   :  { %1991 = vmatpush3.bf16.msra.mxu1 %v2212_v32  ;;  %1998 = vmatprep.subr.bf16.mxu0 %v2214_v35  ;;  %v2253_v32 = vld [vmem:[%s2896_s5 + $0x8] sm:$0xff]   ;;  %v2255_v35 = vld [vmem:[%s2896_s5 + $0x50] sm:$0xff]  }
  0x22   :  { %2020 = vmatprep.subr.bf16.mxu1 %v2215_v38  ;;  %v2258_v38 = vld [vmem:[%s2896_s5 + $0x90] sm:$0xff]  }
  0x23   :  { %652 = vmatmul.mubr.bf16.vlgmr.msra.gmra.mrb[0].mxu0 %v92_v47  ;;  %v2266_v47 = vld [vmem:[%s2896_s5 + $0xa0] sm:$0xff]  }
  0x24   :  { %692 = vmatmul.mubr.bf16.vlgmr.msra.gmra.mrb[0].mxu1 %v94_v48  ;;  %1999 = vmatpush3.bf16.msra.mxu0 %v2216_v46  ;;  %v2265_v46 = vld [vmem:[%s2896_s5 + $0x20] sm:$0xff]   ;;  %v2267_v48 = vld [vmem:[%s2896_s5 + $0x68] sm:$0xff]  }
  0x25   :  { %2021 = vmatpush3.bf16.msra.mxu1 %v2217_v49  ;;  %2000 = vmatprep.subr.bf16.mxu0 %v2218_v52  ;;  %v2268_v49 = vld [vmem:[%s2896_s5 + $0xe8] sm:$0xff]   ;;  %v2271_v52 = vld [vmem:[%s2896_s5 + $0x70] sm:$0xff]  }
  0x26   :  { %2022 = vmatprep.subr.bf16.mxu1 %v2219_v53  ;;  %731 = vmatprep.mubr.bf16.mxu0 %v97_v20  ;;  %v2272_v53 = vld [vmem:[%s2896_s5 + $0xf0] sm:$0xff]   ;;  %v2294_v20 = vld [vmem:[%s2896_s5 + $0x118] sm:$0xff]  }
  0x27   :  { %771 = vmatprep.mubr.bf16.mxu1 %v99_v23  ;;  %v2297_v23 = vld [vmem:[%s2896_s5 + $0x1e0] sm:$0xff]  }
  0x28   :  { %2001 = vmatpush3.bf16.msra.mxu0 %v2220_v54  ;;  %v784_v54 = vld [vmem:[%s2892_s1] sm:$0xff] }
  0x29   :  { %2023 = vmatpush3.bf16.msra.mxu1 %v2221_v55  ;;  %2002 = vmatprep.subr.bf16.mxu0 %v2222_v56  ;;  %v2273_v55 = vld [vmem:[%s2896_s5 + $0x30] sm:$0xff]   ;;  %v795_v56 = vrot.slane %v784_v54, %v2530_v41 }
  0x2a   :  { %2024 = vmatprep.subr.bf16.mxu1 %v2223_v57  ;;  %v788_v57 = vcombine.high %v784_v54, %v784_v54 }
  0x2c   :  { %2003 = vmatpush3.bf16.msra.mxu0 %v2224_v58  ;;  %v2274_v58 = vld [vmem:[%s2896_s5 + $0xb0] sm:$0xff]  }
  0x2d   :  { %2025 = vmatpush3.bf16.msra.mxu1 %v2225_v59  ;;  %2004 = vmatprep.subr.bf16.mxu0 %v2226_v60  ;;  %v2275_v59 = vld [vmem:[%s2896_s5 + $0x78] sm:$0xff]   ;;  %v803_v60 = vcombine.high %v795_v56, %v795_v56 }
  0x2e   :  { %2026 = vmatprep.subr.bf16.mxu1 %v2227_v61  ;;  %v802_v61 = vrot.slane %v788_v57, %v2530_v41 }
  0x30   :  { %2005 = vmatpush3.bf16.msra.mxu0 %v2228_v62  ;;  %v2276_v62 = vld [vmem:[%s2896_s5 + $0xf8] sm:$0xff]  }
  0x31   :  { %2027 = vmatpush3.bf16.msra.mxu1 %v2229_v63  ;;  %2006 = vmatprep.subr.bf16.mxu0 %v2230_v0  ;;  %v2277_v63 = vld [vmem:[%s2896_s5 + $0x38] sm:$0xff]   ;;  %v831_v0 = vpack.c.bf16 %v803_v60, %v803_v60 }
  0x32   :  { %2028 = vmatprep.subr.bf16.mxu1 %v2231_v1  ;;  %v804_v1 = vcombine.high %v802_v61, %v802_v61 }
  0x34   :  { %2007 = vmatpush3.bf16.msra.mxu0 %v2232_v2  ;;  %v2278_v2 = vld [vmem:[%s2896_s5 + $0xb8] sm:$0xff]  }
  0x35   :  { %2029 = vmatpush3.bf16.msra.mxu1 %v2233_v3  ;;  %2008 = vmatprep.subr.bf16.mxu0 %v2234_v4  ;;  %v833_v3 = vpack.c.bf16 %v804_v1, %v804_v1  ;;  %v2280_v4 = vld [vmem:[%s2896_s5 + $0x140] sm:$0xff]  }
  0x36   :  { %2030 = vmatprep.subr.bf16.mxu1 %v2235_v5  ;;  %v2281_v5 = vld [vmem:[%s2896_s5 + $0x1c0] sm:$0xff]  }
  0x38   :  { %2009 = vmatpush3.bf16.msra.mxu0 %v2236_v6  ;;  %v2282_v6 = vld [vmem:[%s2896_s5 + $0x100] sm:$0xff]  }
  0x39   :  { %2031 = vmatpush3.bf16.msra.mxu1 %v2237_v7  ;;  %2010 = vmatprep.subr.bf16.mxu0 %v2238_v8  ;;  %v830_v7 = vpack.c.bf16 %v795_v56, %v795_v56  ;;  %v832_v8 = vpack.c.bf16 %v802_v61, %v802_v61 }
  0x3a   :  { %2032 = vmatprep.subr.bf16.mxu1 %v2239_v9  ;;  %v2283_v9 = vld [vmem:[%s2896_s5 + $0x180] sm:$0xff]  }
  0x3c   :  { %2011 = vmatpush3.bf16.msra.mxu0 %v2240_v11  ;;  %v2285_v11 = vld [vmem:[%s2896_s5 + $0x1c8] sm:$0xff]  }
  0x3d   :  { %2033 = vmatpush3.bf16.msra.mxu1 %v2241_v14  ;;  %2012 = vmatprep.subr.bf16.mxu0 %v2242_v15  ;;  %v2288_v14 = vld [vmem:[%s2896_s5 + $0x150] sm:$0xff]  }
  0x3e   :  { %2034 = vmatprep.subr.bf16.mxu1 %v2243_v18  ;;  %v2289_v15 = vld [vmem:[%s2896_s5 + $0x1d0] sm:$0xff]   ;;  %v2292_v18 = vld [vmem:[%s2896_s5 + $0x158] sm:$0xff]  }
  0x40   :  { %2013 = vmatpush3.bf16.msra.mxu0 %v2244_v19  ;;  %v2293_v19 = vld [vmem:[%s2896_s5 + $0x1d8] sm:$0xff]  }
  0x41   :  { %2035 = vmatpush3.bf16.msra.mxu1 %v2245_v22  ;;  %2042 = vmatprep.subr.bf16.mxu0 %v2247_v24  ;;  %v2296_v22 = vld [vmem:[%s2896_s5 + $0x160] sm:$0xff]  }
  0x42   :  { %2064 = vmatprep.subr.bf16.mxu1 %v2248_v25  ;;  %v2298_v24 = vld [vmem:[%s2896_s5 + $0x120] sm:$0xff]  }
  0x43   :  { %732 = vmatmul.mubr.bf16.vlgmr.msra.gmra.mrb[4].mxu0 %v96_v27  ;;  %v2299_v25 = vld [vmem:[%s2896_s5 + $0x1a0] sm:$0xff]   ;;  %v2301_v27 = vld [vmem:[%s2896_s5 + $0x1e8] sm:$0xff]  }
  0x44   :  { %772 = vmatmul.mubr.bf16.vlgmr.msra.gmra.mrb[4].mxu1 %v98_v28  ;;  %2043 = vmatpush3.bf16.msra.mxu0 %v2249_v26  ;;  %v2300_v26 = vld [vmem:[%s2896_s5 + $0x168] sm:$0xff]  }
  0x45   :  { %2065 = vmatpush3.bf16.msra.mxu1 %v2250_v29  ;;  %2044 = vmatprep.subr.bf16.mxu0 %v2251_v30  ;;  %v2302_v28 = vld [vmem:[%s2896_s5 + $0x128] sm:$0xff]   ;;  %v2304_v30 = vld [vmem:[%s2896_s5 + $0x170] sm:$0xff]  }
  0x46   :  { %2066 = vmatprep.subr.bf16.mxu1 %v2252_v31  ;;  %1389 = vmatprep.mubr.bf16.mxu0 %v831_v0  ;;  %v2303_v29 = vld [vmem:[%s2896_s5 + $0x1a8] sm:$0xff]   ;;  %v2305_v31 = vld [vmem:[%s2896_s5 + $0x1f0] sm:$0xff]  }
  0x47   :  { %1429 = vmatprep.mubr.bf16.mxu1 %v833_v3 }
  0x48   :  { %2045 = vmatpush3.bf16.msra.mxu0 %v2253_v32  ;;  %v785_v32 = vld [vmem:[%s2892_s1 + $0x8] sm:$0xff] }
  0x49   :  { %2067 = vmatpush3.bf16.msra.mxu1 %v2254_v34  ;;  %2046 = vmatprep.subr.bf16.mxu0 %v2255_v35 }
  0x4a   :  { %2068 = vmatprep.subr.bf16.mxu1 %v2256_v36 }
  0x4c   :  { %2047 = vmatpush3.bf16.msra.mxu0 %v2257_v37 }
  0x4d   :  { %2069 = vmatpush3.bf16.msra.mxu1 %v2258_v38  ;;  %2048 = vmatprep.subr.bf16.mxu0 %v2259_v39 }
  0x4e   :  { %2070 = vmatprep.subr.bf16.mxu1 %v2260_v40 }
  0x50   :  { %2049 = vmatpush3.bf16.msra.mxu0 %v2261_v42 }
  0x51   :  { %2071 = vmatpush3.bf16.msra.mxu1 %v2262_v43  ;;  %2050 = vmatprep.subr.bf16.mxu0 %v2263_v44 }
  0x52   :  { %2072 = vmatprep.subr.bf16.mxu1 %v2264_v45 }
  0x54   :  { %2051 = vmatpush3.bf16.msra.mxu0 %v2265_v46 }
  0x55   :  { %2073 = vmatpush3.bf16.msra.mxu1 %v2266_v47  ;;  %2052 = vmatprep.subr.bf16.mxu0 %v2267_v48 }
  0x56   :  { %2074 = vmatprep.subr.bf16.mxu1 %v2268_v49 }
  0x58   :  { %2053 = vmatpush3.bf16.msra.mxu0 %v2269_v50 }
  0x59   :  { %2075 = vmatpush3.bf16.msra.mxu1 %v2270_v51  ;;  %2054 = vmatprep.subr.bf16.mxu0 %v2271_v52 }
  0x5a   :  { %2076 = vmatprep.subr.bf16.mxu1 %v2272_v53 }
  0x5c   :  { %2055 = vmatpush3.bf16.msra.mxu0 %v2273_v55 }
  0x5d   :  { %2077 = vmatpush3.bf16.msra.mxu1 %v2274_v58  ;;  %2056 = vmatprep.subr.bf16.mxu0 %v2275_v59 }
  0x5e   :  { %2078 = vmatprep.subr.bf16.mxu1 %v2276_v62 }
  0x60   :  { %2057 = vmatpush3.bf16.msra.mxu0 %v2277_v63 }
  0x61   :  { %2079 = vmatpush3.bf16.msra.mxu1 %v2278_v2  ;;  %2086 = vmatprep.subr.bf16.mxu0 %v2280_v4 }
  0x62   :  { %2108 = vmatprep.subr.bf16.mxu1 %v2281_v5 }
  0x63   :  { %1390 = vmatmul.mubr.bf16.vlgmr.msra.gmra.mrb[8].mxu0 %v830_v7 }
  0x64   :  { %1430 = vmatmul.mubr.bf16.vlgmr.msra.gmra.mrb[8].mxu1 %v832_v8  ;;  %2087 = vmatpush3.bf16.msra.mxu0 %v2282_v6 }
  0x65   :  { %2109 = vmatpush3.bf16.msra.mxu1 %v2283_v9  ;;  %2088 = vmatprep.subr.bf16.mxu0 %v2284_v10 }
  0x66   :  { %2110 = vmatprep.subr.bf16.mxu1 %v2285_v11 }
  0x68   :  { %2089 = vmatpush3.bf16.msra.mxu0 %v2286_v12 }
  0x69   :  { %2111 = vmatpush3.bf16.msra.mxu1 %v2287_v13  ;;  %2090 = vmatprep.subr.bf16.mxu0 %v2288_v14 }
  0x6a   :  { %2112 = vmatprep.subr.bf16.mxu1 %v2289_v15 }
  0x6c   :  { %2091 = vmatpush3.bf16.msra.mxu0 %v2290_v16 }
  0x6d   :  { %2113 = vmatpush3.bf16.msra.mxu1 %v2291_v17  ;;  %2092 = vmatprep.subr.bf16.mxu0 %v2292_v18 }
  0x6e   :  { %2114 = vmatprep.subr.bf16.mxu1 %v2293_v19 }
  0x70   :  { %2093 = vmatpush3.bf16.msra.mxu0 %v2294_v20 }
  0x71   :  { %2115 = vmatpush3.bf16.msra.mxu1 %v2295_v21  ;;  %2094 = vmatprep.subr.bf16.mxu0 %v2296_v22 }
  0x72   :  { %2116 = vmatprep.subr.bf16.mxu1 %v2297_v23 }
  0x74   :  { %2095 = vmatpush3.bf16.msra.mxu0 %v2298_v24 }
  0x75   :  { %2117 = vmatpush3.bf16.msra.mxu1 %v2299_v25  ;;  %2096 = vmatprep.subr.bf16.mxu0 %v2300_v26 }
  0x76   :  { %2118 = vmatprep.subr.bf16.mxu1 %v2301_v27 }
  0x77   :  { %18 = vsyncpa [#allocation3], 0  ;;  %v812_v34 = vrot.slane %v785_v32, %v2530_v41  ;;  %v805_v35 = vcombine.high %v785_v32, %v785_v32  ;;  %v2306_v36 = vld [vmem:[%s2896_s5 + $0x130] sm:$0xff]   ;;  %v2308_v38 = vld [vmem:[%s2896_s5 + $0x178] sm:$0xff]   ;;  %v2346_v52 = vmov 0.0|0.0   ;;  %vm2347_vm0 = vmmov 0  }
  0x78   :  { %2097 = vmatpush3.bf16.msra.mxu0 %v2302_v28  ;;  %v2307_v37 = vld [vmem:[%s2896_s5 + $0x1b0] sm:$0xff]   ;;  %v2309_v39 = vld [vmem:[%s2896_s5 + $0x1f8] sm:$0xff]   ;;  %v1525_v50 = vld [vmem:[%s2899_s8 + $0x8] sm:$0xff]  ;;  %v2348_v53 = vmov 0.0   ;;  %vm1526_vm1 = vcmask 130048   ;;  %vm1700_vm2 = vcmask 1041408  }
  0x79   :  { %2119 = vmatpush3.bf16.msra.mxu1 %v2303_v29  ;;  %2098 = vmatprep.subr.bf16.mxu0 %v2304_v30  ;;  %v820_v40 = vcombine.high %v812_v34, %v812_v34  ;;  %v819_v42 = vrot.slane %v805_v35, %v2530_v41  ;;  %v2310_v45 = vld [vmem:[%s2896_s5 + $0x138] sm:$0xff]   ;;  %v834_v48 = vpack.c.bf16 %v812_v34, %v812_v34  ;;  %v1524_v41 = vld [vmem:[%s2899_s8] sm:$0xff]  ;;  %vm1696_vm3 = vcmask 146432   ;;  %s2351_s16 = smov [#allocation2]  }
  0x7a   :  { %2120 = vmatprep.subr.bf16.mxu1 %v2305_v31  ;;  %v2311_v46 = vld [vmem:[%s2896_s5 + $0x1b8] sm:$0xff]   ;;  %v2164_v51 = vpack.c.bf16 %v1525_v50, %v1524_v41  ;;  %v1818_v56 = vld [vmem:[%s2895_s4] ss:$0 sm:$0xff]  ;;  %s1810_s17 = sshll.u32 %s2351_s16, 4  ;;  %vm1802_vm4 = vcmask 9216   ;;  %s1811_s17 = int_to_ptr.vmem [resolvable:$true] %s1810_s17 }
  0x7b   :  { %v835_v43 = vpack.c.bf16 %v820_v40, %v820_v40  ;;  %v821_v44 = vcombine.high %v819_v42, %v819_v42  ;;  %v836_v49 = vpack.c.bf16 %v819_v42, %v819_v42  ;;  %v1883_v17 = vld [vmem:[%s2897_s6] ss:$0 sm:$0xff]  ;;  %p2326_p1 = scmp.lt.s32.totalorder %s1811_s17, %s1811_s17 }
  0x7c   :  { %2099 = vmatpush3.bf16.msra.mxu0 %v2306_v36 }
  0x7d   :  { %2121 = vmatpush3.bf16.msra.mxu1 %v2307_v37  ;;  %2100 = vmatprep.subr.bf16.mxu0 %v2308_v38  ;;  %v837_v47 = vpack.c.bf16 %v821_v44, %v821_v44 }
  0x7e   :  { %2122 = vmatprep.subr.bf16.mxu1 %v2309_v39  ;;  %1469 = vmatprep.mubr.bf16.mxu0 %v835_v43 }
  0x7f   :  { %1509 = vmatprep.mubr.bf16.mxu1 %v837_v47 }
  0x80   :  { %2101 = vmatpush3.bf16.msra.mxu0 %v2310_v45  ;;  %v1522_v45 = vld [vmem:[%s2898_s7] sm:$0xff] }
  0x81   :  { %2123 = vmatpush3.bf16.msra.mxu1 %v2311_v46  ;;  %2169 = vmatprep.subr.bf16.mxu0 %v2346_v52  ;;  %v1523_v46 = vld [vmem:[%s2898_s7 + $0x8] sm:$0xff] }
  0x82   :  { %2163 = vmatprep.subr.bf16.mxu1 %v2346_v52  ;;  %v2167_v41 = vpack.c.bf16 %v1523_v46, %v1522_v45 }
  0x83   :  { %1470 = vmatmul.mubr.bf16.vlgmr.msra.gmra.mrb[12].mxu0 %v834_v48 }
  0x84   :  { %1510 = vmatmul.mubr.bf16.vlgmr.msra.gmra.mrb[12].mxu1 %v836_v49  ;;  %2160 = vmatprep.mubr.msk.f32.mxu0 %vm2347_vm0, %v2348_v53 }
  0x85   :  { %2165 = vmatpush3.bf16.msra.mxu1 %v2164_v51  ;;  %2144 = vmatprep.mubr.msk.f32.mxu1 %vm2347_vm0, %v2348_v53 }
  0x86   :  { %2166 = vmatprep.subr.bf16.mxu1 %v2346_v52 }
  0xf6   :  { %v1970_v54 = vpop.f32.mrb[0].mxu0 }
  0xf7   :  { %v1992_v55 = vpop.f32.mrb[0].mxu1  ;;  %v1971_v57 = vpop.f32.mrb[1].mxu0 }
  0xf8   :  { %v1993_v58 = vpop.f32.mrb[1].mxu1  ;;  %v1972_v59 = vadd.f32 %v1971_v57, %v1970_v54  ;;  %v1973_v61 = vpop.f32.mrb[2].mxu0 }
  0xf9   :  { %v1994_v60 = vadd.f32 %v1993_v58, %v1992_v55  ;;  %v1995_v62 = vpop.f32.mrb[2].mxu1  ;;  %v1974_v63 = vpop.f32.mrb[3].mxu0  ;;  %v1686_v55 = vld [vmem:[%s2901_s10] sm:$0xff]  ;;  %v1688_v58 = vld [vmem:[%s2901_s10 + $0x10] sm:$0x3]  ;;  %v2350_v61 = vmov 1  }
  0xfa   :  { %v1996_v0 = vpop.f32.mrb[3].mxu1  ;;  %v654_v1 = vadd.f32 %v1972_v59, %v1818_v56  ;;  %v1687_v56 = vld [vmem:[%s2901_s10 + $0x8] sm:$0xff]  ;;  %v1774_v59 = vld [vmem:[%s2893_s2] sm:$0x3] }
  0xfb   :  { %v2170_v57 = vpack.c.bf16 %v1687_v56, %v1686_v55 }
  0xfc   :  { %v694_v2 = vadd.f32 %v1994_v60, %v654_v1  ;;  %v2349_v60 = vmov 0  }
  0xfd   :  { %2171 = vmatpush3.bf16.msra.mxu0 %v2170_v57  ;;  %2179 = vset.pattern.permute.xlu0 %v2349_v60 }
  0xfe   :  { %2158 = vmatprep.subr.mxu0 %v2348_v53  ;;  %1778 = vperm.xlu0 %2179, %v1774_v59  }
 0x101   :  { %2159 = vmatpush3.msk.msra.mxu0 %vm1700_vm2, %v1688_v58 }
 0x102   :  { %2180 = vset.pattern.permute.xlu0 %v2350_v61 }
 0x103   :  { %1788 = vperm.xlu0 %2180, %v1774_v59  }
 0x116   :  { %v2014_v3 = vpop.f32.mrb[4].mxu0 }
 0x117   :  { %v2036_v4 = vpop.f32.mrb[4].mxu1  ;;  %v2015_v5 = vpop.f32.mrb[5].mxu0 }
 0x118   :  { %v2037_v6 = vpop.f32.mrb[5].mxu1  ;;  %v2016_v7 = vadd.f32 %v2015_v5, %v2014_v3  ;;  %v2017_v9 = vpop.f32.mrb[6].mxu0 }
 0x119   :  { %v2038_v8 = vadd.f32 %v2037_v6, %v2036_v4  ;;  %v2039_v10 = vpop.f32.mrb[6].mxu1  ;;  %v2018_v11 = vpop.f32.mrb[7].mxu0 }
 0x11a   :  { %v2040_v12 = vpop.f32.mrb[7].mxu1  ;;  %v734_v13 = vadd.f32 %v2016_v7, %v694_v2  ;;  %v1783_v10 = vsub.s32 0, %v2518_v33  ;;  %v1793_v11 = vsub.s32 1, %v2518_v33 }
 0x11b   :  { %v1775_v12 = vld [vmem:[%s2902_s11] sm:$0x3]  ;;  %s2321_s11 = scalar_lea.vmem %s1811_s17, 32 }
 0x11c   :  { %v774_v14 = vadd.f32 %v2038_v8, %v734_v13  ;;  %v1784_v13 = vrot.slane %v1775_v12, %v1783_v10  ;;  %p2322_p0 = scmp.ne.s32.totalorder %s1811_s17, %s2321_s11  ;;  %p2327_p2 = scmp.lt.s32.totalorder %s2321_s11, %s2321_s11 }
 0x11e   :  { %v780_v40 = vmul.f32 0.70710677, %v774_v14  ;;  %v779_v52 = vmul.f32 0.5, %v774_v14  ;;  %v1794_v14 = vrot.slane %v1775_v12, %v1793_v11  ;;  %p2328_p3 = por %p2327_p2, %p2326_p1 }
 0x120   :  { %2313 = verf.f32 %v780_v40  ;;  %p2329_p4 = pnand %p2328_p3, %p2322_p0 }
 0x12a   :  { %v2314_v44 = vpop.eup %2313 }
 0x12b   :  { %v782_v50 = vadd.f32 1.0, %v2314_v44 }
 0x12d   :  { %v783_v54 = vmul.f32 %v782_v50, %v779_v52 }
 0x136   :  { %v2058_v15 = vpop.f32.mrb[8].mxu0 }
 0x137   :  { %v2080_v16 = vpop.f32.mrb[8].mxu1  ;;  %v2059_v18 = vpop.f32.mrb[9].mxu0 }
 0x138   :  { %v2081_v19 = vpop.f32.mrb[9].mxu1  ;;  %v2060_v20 = vadd.f32 %v2059_v18, %v2058_v15  ;;  %v2061_v22 = vpop.f32.mrb[10].mxu0  ;;  %v1951_v15 = vld [vmem:[%s2903_s12] ss:$0 sm:$0xff] }
 0x139   :  { %v2082_v21 = vadd.f32 %v2081_v19, %v2080_v16  ;;  %v2083_v23 = vpop.f32.mrb[10].mxu1  ;;  %v2062_v24 = vpop.f32.mrb[11].mxu0 }
 0x13a   :  { %v2084_v25 = vpop.f32.mrb[11].mxu1  ;;  %v1392_v26 = vadd.f32 %v2060_v20, %v1883_v17 }
 0x13c   :  { %v1432_v27 = vadd.f32 %v2082_v21, %v1392_v26 }
 0x156   :  { %v2102_v28 = vpop.f32.mrb[12].mxu0 }
 0x157   :  { %v2124_v29 = vpop.f32.mrb[12].mxu1  ;;  %v2103_v30 = vpop.f32.mrb[13].mxu0 }
 0x158   :  { %v2125_v31 = vpop.f32.mrb[13].mxu1  ;;  %v2104_v32 = vadd.f32 %v2103_v30, %v2102_v28  ;;  %v2105_v35 = vpop.f32.mrb[14].mxu0 }
 0x159   :  { %v2126_v34 = vadd.f32 %v2125_v31, %v2124_v29  ;;  %v2127_v36 = vpop.f32.mrb[14].mxu1  ;;  %v2106_v37 = vpop.f32.mrb[15].mxu0 }
 0x15a   :  { %v2128_v38 = vpop.f32.mrb[15].mxu1  ;;  %v1472_v39 = vadd.f32 %v2104_v32, %v1432_v27 }
 0x15c   :  { %v1512_v42 = vadd.f32 %v2126_v34, %v1472_v39 }
 0x15e   :  { %v1518_v43 = vmul.f32 0.70710677, %v1512_v42  ;;  %v1517_v48 = vmul.f32 0.5, %v1512_v42 }
 0x160   :  { %2315 = verf.f32 %v1518_v43 }
 0x16a   :  { %v2316_v47 = vpop.eup %2315 }
 0x16b   :  { %v1520_v49 = vadd.f32 1.0, %v2316_v47 }
 0x16d   :  { %v1521_v51 = vmul.f32 %v1520_v49, %v1517_v48 }
 0x16f   :  { %2145 = vmatmul.mubr.msk.f32.vlgmr.msra.gmra.mrb[16].mxu1 %vm1526_vm1, %v1521_v51 }
 0x170   :  { %2168 = vmatpush3.bf16.msra.mxu1 %v2167_v41  ;;  %2151 = vmatprep.mubr.msk.f32.mxu1 %vm2347_vm0, %v2348_v53  ;;  %v1950_v53 = vld [vmem:[%s2900_s9] ss:$0 sm:$0xff] }
 0x173   :  { %2152 = vmatmul.mubr.msk.f32.vlgmr.msra.gmra.mrb[18].mxu1 %vm1526_vm1, %v783_v54 }
 0x17d   :  { %v1779_v9 = vpop.permute.xlu0 %1778 }
 0x17e   :  { %v1785_v18 = vmul.f32 %v1784_v13, %v1779_v9 }
 0x182   :  { %v1789_v16 = vpop.permute.xlu0 %1788 }
 0x183   :  { %v1795_v21 = vmul.f32 %v1794_v14, %v1789_v16 }
 0x242   :  { %v1596_v62 = vpop.f32.mrb[16].mxu1 }
 0x243   :  { %v2146_v63 = vpop.f32.mrb[17].mxu1 }
 0x246   :  { %v1669_v0 = vpop.f32.mrb[18].mxu1 }
 0x247   :  { %v1670_v1 = vadd.f32 %v1669_v0, %v1596_v62  ;;  %v2153_v2 = vpop.f32.mrb[19].mxu1 }
 0x249   :  { %v1680_v3 = vadd.f32 %v1950_v53, %v1670_v1 }
 0x24b   :  { %v1682_v4 = vmul.f32 0.70710677, %v1680_v3  ;;  %v1681_v6 = vmul.f32 0.5, %v1680_v3 }
 0x24d   :  { %2317 = verf.f32 %v1682_v4 }
 0x257   :  { %v2318_v5 = vpop.eup %2317 }
 0x258   :  { %v1684_v7 = vadd.f32 1.0, %v2318_v5 }
 0x25a   :  { %v1685_v8 = vmul.f32 %v1684_v7, %v1681_v6 }
 0x25c   :  { %2161 = vmatmul.mubr.msk.f32.vlgmr.msra.gmra.mrb[16].mxu0 %vm1696_vm3, %v1685_v8 }
 0x32f   :  { %v1770_v17 = vpop.f32.mrb[16].mxu0 }
 0x330   :  { %v1771_v19 = vadd.f32 %v1951_v15, %v1770_v17  ;;  %v2162_v20 = vpop.f32.mrb[17].mxu0 }
 0x332   :  { %v1786_v22 = vadd.f32 %v1785_v18, %v1771_v19 }
 0x334   :  { %v1796_v23 = vadd.f32 %v1795_v21, %v1786_v22 }
 0x336   :  { %v1798_v24 = vmul.f32 0.70710677, %v1796_v23  ;;  %v1797_v25 = vmul.f32 0.5, %v1796_v23 }
 0x338   :  { %2319 = verf.f32 %v1798_v24 }
 0x342   :  { %v2320_v33 = vpop.eup %2319 }
 0x343   :  { %v1800_v26 = vadd.f32 1.0, %v2320_v33 }
 0x345   :  { %v1801_v27 = vmul.f32 %v1800_v26, %v1797_v25 }
 0x347   :  { %1803 = vst.msk [vmem:[#allocation2] sm:$0x3] %vm1802_vm4, %v1801_v27 }
 0x348   :  { %2332 = shalt.err (!%p2329_p4)
}
 0x349   :  { %s2333_s19 = scalar_lea.hbm %s2904_s13, 32 }
 0x34a   :  { %p2334_p5 = scmp.ne.s32.totalorder %s2904_s13, %s2333_s19  ;;  %p2337_p6 = scmp.lt.u32.totalorder %s2333_s19, %s2904_s13 }
 0x34c   :  { %p2339_p7 = pnand %p2337_p6, %p2334_p5 }
 0x34e   :  { %2342 = shalt.err (!%p2339_p7)
}
 0x34f   :  { %1813 = dma.vmem_to_hbm [thread:$0]  %s1811_s17, 32, %s2904_s13, [#allocation3]  }
 0x350   :  { %2343 = dma.done.wait [#allocation3], 32  }
 0x351   :  { %2344 = vsyncadd [#allocation3], 4294967264 }
 0x352   :  { %1817 = vsyncpa [#allocation3], 1 }

</bundles_post_ra>
